<compile_context>
chip_gen: v7x
topology: tpu7x:2x2x1
jax: 0.10.0
libtpu: 0.0.40
codegen_flags: <defaults>
</compile_context>

<pallas_src>
import jax
import jax.numpy as jnp
from jax.experimental import pallas as pl
from jax.experimental.pallas import tpu as pltpu

_LANES = 128


def _swish_kernel(x_ref, o_ref):
    x = x_ref[...]
    # sigmoid(x) = 1 / (1 + exp(-x)).  exp and the approximate reciprocal both
    # issue on the EUP, which co-issues with vld/vst — compute stays hidden
    # under the DMA that bounds this kernel.
    sig = pl.reciprocal(1.0 + jnp.exp(-x), approx=True)
    o_ref[...] = (x * sig).astype(o_ref.dtype)


def swish(x: jax.Array, *, row_tile: int = 4096) -> jax.Array:
    """Elementwise x * sigmoid(x) via a Pallas TPU kernel. Any shape/dtype."""
    orig_shape = x.shape
    orig_dtype = x.dtype
    n = x.size
    if n == 0:
        return x

    rem = n % _LANES
    if rem == 0:
        # Fast path: pure reshape, no extra HBM copies.
        flat = x.reshape(-1)
    else:
        # Rare path: pad only the final partial 128-lane row (< 128 elements).
        flat = jnp.concatenate(
            [x.reshape(-1), jnp.zeros((_LANES - rem,), dtype=orig_dtype)]
        )

    rows = flat.size // _LANES
    x2d = flat.reshape(rows, _LANES)

    # Block rows: as large as row_tile, but never larger than the array; when
    # smaller than the full array it must be a multiple of 8 (sublane tiling).
    block_rows = min(row_tile, rows)
    if block_rows < rows and block_rows % 8 != 0:
        block_rows = max(8, (block_rows // 8) * 8)
    grid = (pl.cdiv(rows, block_rows),)

    itemsize = jnp.dtype(orig_dtype).itemsize
    out2d = pl.pallas_call(
        _swish_kernel,
        out_shape=jax.ShapeDtypeStruct((rows, _LANES), orig_dtype),
        grid_spec=pltpu.PrefetchScalarGridSpec(
            num_scalar_prefetch=0,
            grid=grid,
            in_specs=[pl.BlockSpec((block_rows, _LANES), lambda i: (i, 0))],
            out_specs=pl.BlockSpec((block_rows, _LANES), lambda i: (i, 0)),
        ),
        compiler_params=pltpu.CompilerParams(
            dimension_semantics=("parallel",),
        ),
        cost_estimate=pl.CostEstimate(
            flops=4 * n,
            transcendentals=n,
            bytes_accessed=2 * n * itemsize,
        ),
    )(x2d)

    out_flat = out2d.reshape(-1)
    if rem != 0:
        out_flat = out_flat[:n]
    return out_flat.reshape(orig_shape)


if __name__ == "__main__":
    key = jax.random.PRNGKey(0)

    # Primary check: shape implied by the module's usage (B, C, H, W).
    x = jax.random.normal(key, (2, 4, 16, 16), dtype=jnp.float32)
    out = swish(x)
    jax.block_until_ready(out)
    ref = x * jax.nn.sigmoid(x)
    assert out.shape == x.shape and out.dtype == x.dtype
    # Tolerance accounts for the EUP approximate reciprocal (rel err ~1e-4).
    assert jnp.allclose(out, ref, atol=5e-3, rtol=5e-3)

    # Remainder path: numel not a multiple of 128 (exercises partial-row pad).
    x_odd = jax.random.normal(jax.random.PRNGKey(1), (2, 3, 17, 11), dtype=jnp.float32)
    out_odd = swish(x_odd)
    jax.block_until_ready(out_odd)
    ref_odd = x_odd * jax.nn.sigmoid(x_odd)
    assert out_odd.shape == x_odd.shape
    assert jnp.allclose(out_odd, ref_odd, atol=5e-3, rtol=5e-3)

    # Multi-block path: rows > row_tile so the grid has >= 2 steps (megacore).
    x_big = jax.random.normal(jax.random.PRNGKey(2), (16, 16, 64, 64), dtype=jnp.float32)
    out_big = swish(x_big)
    jax.block_until_ready(out_big)
    ref_big = x_big * jax.nn.sigmoid(x_big)
    assert jnp.allclose(out_big, ref_big, atol=5e-3, rtol=5e-3)

    print("KERNEL_OK")
</pallas_src>

<mosaic_0001>
module attributes {stable_mosaic.version = 11 : i64} {
  func.func @_swish_kernel(%arg0: i32, %arg1: memref<16x128xf32, #tpu.memory_space<vmem>>, %arg2: memref<16x128xf32, #tpu.memory_space<vmem>>) attributes {dimension_semantics = [#tpu.dimension_semantics<parallel>], iteration_bounds = array<i64: 1>, scalar_prefetch = 0 : i64, scratch_operands = 0 : i64, tpu.core_type = #tpu.core_type<tc>, window_params = [{transform_indices = @transform_0, window_bounds = array<i64: 16, 128>}, {transform_indices = @transform_1, window_bounds = array<i64: 16, 128>}]} {
    %c0 = arith.constant 0 : index
    %c0_0 = arith.constant 0 : index
    %0 = vector.load %arg1[%c0, %c0_0] : memref<16x128xf32, #tpu.memory_space<vmem>>, vector<16x128xf32>
    %cst = arith.constant 0.000000e+00 : f32
    %1 = vector.broadcast %cst : f32 to vector<16x128xf32>
    %2 = arith.subf %1, %0 : vector<16x128xf32>
    %3 = math.exp %2 : vector<16x128xf32>
    %cst_1 = arith.constant 1.000000e+00 : f32
    %4 = vector.broadcast %cst_1 : f32 to vector<16x128xf32>
    %5 = arith.addf %4, %3 : vector<16x128xf32>
    %6 = tpu.reciprocal %5 {approx = true} : vector<16x128xf32> -> vector<16x128xf32>
    %7 = arith.mulf %0, %6 : vector<16x128xf32>
    %c0_2 = arith.constant 0 : index
    %c0_3 = arith.constant 0 : index
    %8 = vector.load %arg2[%c0_2, %c0_3] : memref<16x128xf32, #tpu.memory_space<vmem>>, vector<16x128xf32>
    tpu.vector_store %arg2[%c0_2, %c0_3], %7 {strides = array<i32>} : memref<16x128xf32, #tpu.memory_space<vmem>>, vector<16x128xf32>,
    return
  }
  func.func @transform_0(%arg0: i32) -> (i32, i32) {
    %c0_i32 = arith.constant 0 : i32
    %c0_i32_0 = arith.constant 0 : i32
    return %arg0, %c0_i32 : i32, i32
  }
  func.func @transform_1(%arg0: i32) -> (i32, i32) {
    %c0_i32 = arith.constant 0 : i32
    %c0_i32_0 = arith.constant 0 : i32
    return %arg0, %c0_i32 : i32, i32
  }
}

</mosaic_0001>

<bundles_post_ra>
// kernel: tpu_custom_call.1
= control target key start
LH: loop header
LB: loop body
LE: loop exit
PB: predicated region body
PF: predicated region fallthrough
CT: control target
= control target key end

     0   :  { %6 = vsyncpa [#allocation3], 0  ;;  %s160_s0 = inlined_call_operand.hbm [shape: f32[16,128], index: 0, kind: input, shape index: {}]   ;;  %s161_s1 = inlined_call_operand.hbm [shape: f32[16,128], index: 1, kind: output, shape index: {}]  }
   0x1   :  { %7 = vsyncpa [#allocation4], 0  ;;  %s116_s6 = smov [#allocation2]   ;;  %s68_s10 = scalar_lea.hbm %s160_s0, 256 }
   0x2   :  { %s13_s7 = sshll.u32 %s116_s6, 4  ;;  %p69_p0 = scmp.ne.s32.totalorder %s160_s0, %s68_s10  ;;  %s14_s7 = int_to_ptr.vmem [resolvable:$true] %s13_s7 }
   0x3   :  { %p72_p1 = scmp.lt.u32.totalorder %s68_s10, %s160_s0 }
   0x5   :  { %p74_p2 = pnand %p72_p1, %p69_p0 }
   0x7   :  { %77 = shalt.err (!%p74_p2)
}
   0x8   :  { %s78_s15 = scalar_lea.vmem %s14_s7, 256  ;;  %p83_p4 = scmp.lt.s32.totalorder %s14_s7, %s14_s7 }
   0x9   :  { %p79_p3 = scmp.ne.s32.totalorder %s14_s7, %s78_s15  ;;  %p84_p5 = scmp.lt.s32.totalorder %s78_s15, %s78_s15 }
   0xb   :  { %p85_p6 = por %p84_p5, %p83_p4 }
   0xd   :  { %p86_p7 = pnand %p85_p6, %p79_p3 }
   0xf   :  { %89 = shalt.err (!%p86_p7)
}
  0x10   :  { %s117_s16 = smov 128   ;;  %s118_s17 = smov 8  }
  0x11   :  { %19 = dma.hbm_to_vmem [thread:$0]  %s160_s0, 256, %s14_s7, [#allocation3], %s117_s16, %s117_s16, %s118_s17  }
  0x12   :  { %112 = dma.done.wait [#allocation3], 256  }
  0x13   :  { %113 = vsyncadd [#allocation3], 4294967040  ;;  %v23_v0 = vld [vmem:[#allocation2] sm:$0xff]  ;;  %v24_v1 = vld [vmem:[#allocation2 + $0x8] sm:$0xff]  ;;  %s119_s20 = smov [#allocation5]  }
  0x14   :  { %v25_v2 = vsub.f32 0.0, %v23_v0  ;;  %v26_v3 = vsub.f32 0.0, %v24_v1  ;;  %s44_s21 = sshll.u32 %s119_s20, 4  ;;  %s45_s21 = int_to_ptr.vmem [resolvable:$true] %s44_s21 }
  0x15   :  { %s90_s0 = scalar_lea.vmem %s45_s21, 256  ;;  %p95_p9 = scmp.lt.s32.totalorder %s45_s21, %s45_s21 }
  0x16   :  { %v27_v4 = vmul.f32 1.442695, %v25_v2  ;;  %v29_v5 = vmul.f32 1.442695, %v26_v3  ;;  %p91_p8 = scmp.ne.s32.totalorder %s45_s21, %s90_s0  ;;  %p96_p10 = scmp.lt.s32.totalorder %s90_s0, %s90_s0 }
  0x18   :  { %60 = vpow2.f32 %v27_v4  ;;  %p97_p11 = por %p96_p10, %p95_p9 }
  0x19   :  { %62 = vpow2.f32 %v29_v5 }
  0x1a   :  { %p98_p12 = pnand %p97_p11, %p91_p8 }
  0x22   :  { %v61_v6 = vpop.eup %60 }
  0x23   :  { %v63_v7 = vpop.eup %62  ;;  %v31_v8 = vadd.f32 1.0, %v61_v6 }
  0x24   :  { %v32_v9 = vadd.f32 1.0, %v63_v7 }
  0x25   :  { %64 = vrcp.f32 %v31_v8 }
  0x26   :  { %66 = vrcp.f32 %v32_v9 }
  0x2f   :  { %v65_v10 = vpop.eup %64 }
  0x30   :  { %v67_v11 = vpop.eup %66  ;;  %v35_v12 = vmul.f32 %v65_v10, %v23_v0 }
  0x31   :  { %v36_v13 = vmul.f32 %v67_v11, %v24_v1 }
  0x32   :  { %37 = vst [vmem:[#allocation5] sm:$0xff] %v35_v12 }
  0x33   :  { %38 = vst [vmem:[#allocation5 + $0x8] sm:$0xff] %v36_v13 }
  0x34   :  { %101 = shalt.err (!%p98_p12)
}
  0x35   :  { %s102_s24 = scalar_lea.hbm %s161_s1, 256 }
  0x36   :  { %p103_p13 = scmp.ne.s32.totalorder %s161_s1, %s102_s24  ;;  %p106_p0 = scmp.lt.u32.totalorder %s102_s24, %s161_s1 }
  0x38   :  { %p108_p1 = pnand %p106_p0, %p103_p13 }
  0x3a   :  { %111 = shalt.err (!%p108_p1)
}
  0x3b   :  { %50 = dma.vmem_to_hbm [thread:$0]  %s45_s21, 256, %s161_s1, [#allocation4], %s117_s16, %s117_s16, %s118_s17  }
  0x3c   :  { %114 = dma.done.wait [#allocation4], 256  }
  0x3d   :  { %115 = vsyncadd [#allocation4], 4294967040 }
  0x3e   :  { %54 = vsyncpa [#allocation3], 1 }
  0x3f   :  { %55 = vsyncpa [#allocation4], 1 }

</bundles_post_ra>
